<compile_context>
chip_gen: v7x
topology: tpu7x:2x2x1
jax: 0.10.0
libtpu: 0.0.40
codegen_flags: <defaults>
</compile_context>

<pallas_src>
import jax
import jax.numpy as jnp
from jax.experimental import pallas as pl
from jax.experimental.pallas import tpu as pltpu


# --------------------------------------------------------------------------
# Kernel body
# --------------------------------------------------------------------------
def _gated_mlp_kernel(x_ref, wg_ref, wu_ref, bg_ref, bu_ref, wd_ref, bd_ref,
                      o_ref, acc_ref):
    """One (block_t, block_i) step of the fused GatedMLP.

    x_ref:   (block_t, H)       activation tile
    wg_ref:  (H, block_i)       gate half of the pre-transposed gate_up weight
    wu_ref:  (H, block_i)       up   half of the pre-transposed gate_up weight
    bg_ref:  (1, block_i)       gate bias chunk
    bu_ref:  (1, block_i)       up   bias chunk
    wd_ref:  (block_i, H)       pre-transposed down-weight chunk
    bd_ref:  (1, H)             down bias
    o_ref:   (block_t, H)       output tile (written on the last I step only)
    acc_ref: (block_t, H) f32   down-projection accumulator (persists over I)
    """
    i_idx = pl.program_id(1)

    @pl.when(i_idx == 0)
    def _init():
        acc_ref[...] = jnp.zeros_like(acc_ref)

    x = x_ref[...]

    # gate / up projections for this I-chunk: canonical (M,K)x(K,N) MXU
    # matmuls with f32 accumulation (no transposed-RHS contraction anymore).
    gate = jnp.dot(x, wg_ref[...],
                   preferred_element_type=jnp.float32) + bg_ref[...]
    up = jnp.dot(x, wu_ref[...],
                 preferred_element_type=jnp.float32) + bu_ref[...]

    # swiglu: silu(gate) * up, in f32 (sigmoid runs on the EUP slot).
    h = (gate * jax.nn.sigmoid(gate)) * up

    # Partial down projection for this I-chunk; accumulate in f32.
    acc_ref[...] += jnp.dot(h.astype(x.dtype), wd_ref[...],
                            preferred_element_type=jnp.float32)

    @pl.when(i_idx == pl.num_programs(1) - 1)
    def _finalize():
        # b_down is added exactly once, at accumulator finalize.
        o_ref[...] = (acc_ref[...] + bd_ref[...]).astype(o_ref.dtype)


# --------------------------------------------------------------------------
# Tiling helpers
# --------------------------------------------------------------------------
def _align_up(n, m):
    return ((n + m - 1) // m) * m


def _vmem_step_bytes(block_t, block_i, H, w_item, x_item, wbuf=2):
    """Working-set estimate for one grid step (weight slabs wbuf-buffered)."""
    w = 3 * block_i * H * w_item * wbuf            # gate + up + down slabs
    io = 2 * block_t * H * x_item * 2              # x tile + out tile (double-buffered)
    bias = (2 * block_i + H) * w_item * 2
    acc = block_t * H * 4                          # f32 accumulator scratch
    return w + io + bias + acc + (1 << 20)         # + slack


def _select_blocks(T, H, I, x_item, w_item, budget, mult, wbuf):
    """Joint (block_t, block_i) search: biggest block_t first (arithmetic
    intensity), then biggest block_i (MXU width / per-step overhead)."""
    t_cap = min(1024, _align_up(T, mult))
    t_cands = sorted(
        {c for c in (1024, 768, 512, 384, 256, 192, 128, 64, 32, 16, 8)
         if c <= t_cap and c % mult == 0} | {t_cap},
        reverse=True)
    i_cands = [c for c in (512, 384, 256, 128) if I % c == 0]
    if not i_cands:
        raise ValueError(
            f"intermediate_size={I} is not a multiple of 128; pad it via "
            f"prepare_gated_mlp_params (i_multiple=...) instead.")
    for bt in t_cands:
        for bi in i_cands:
            if _vmem_step_bytes(bt, bi, H, w_item, x_item, wbuf) <= budget:
                return bt, bi
    raise ValueError(
        "GatedMLP tile search failed: even the smallest (block_t, block_i) "
        f"tile exceeds the VMEM budget ({budget / 2**20:.1f} MiB) for "
        f"hidden_size={H}. Reduce hidden size per shard or the buffer depth.")


def _weight_spec(shape, index_map, buffers):
    """Weight BlockSpec, optionally with deeper (Buffered) pipelining."""
    if buffers and buffers > 2:
        try:
            return pl.BlockSpec(shape, index_map,
                                pipeline_mode=pl.Buffered(buffers))
        except TypeError:
            pass
    return pl.BlockSpec(shape, index_map)


# --------------------------------------------------------------------------
# Parameter preparation (one-time, outside the hot loop)
# --------------------------------------------------------------------------
def prepare_gated_mlp_params(w_gate_up, b_gate_up, w_down, b_down, *,
                             i_multiple=256):
    """One-time param prep: transpose weights to canonical (K, N) layout and
    zero-pad the intermediate dim I to a multiple of `i_multiple`.

    Inputs follow nn.Linear layout:
      w_gate_up: [2*I, H], b_gate_up: [2*I], w_down: [H, I], b_down: [H]
    Returns:
      w_gate_up_t: [H, 2*I_pad]   (gate columns first, then up columns)
      b_gate_up_r: [1, 2*I_pad]
      w_down_t:    [I_pad, H]
      b_down_r:    [1, H]
    Zero padding is exact: padded gate/up columns produce silu(0)*0 = 0 and the
    corresponding down-weight rows are zero, contributing nothing to the output.
    """
    two_I, H = w_gate_up.shape
    I = two_I // 2
    assert w_down.shape == (H, I), "w_down must be [hidden, intermediate]"
    if H % 128 != 0:
        # TODO(synk): pad H (x columns, weight rows, output slice) for
        # non-128-multiple hidden sizes instead of rejecting them.
        raise ValueError(f"hidden_size={H} must be a multiple of 128 "
                         "(lane dim of the output tile).")

    I_pad = _align_up(I, i_multiple)
    gate_w = w_gate_up[:I].T          # (H, I)
    up_w = w_gate_up[I:].T            # (H, I)
    gate_b = b_gate_up[:I]
    up_b = b_gate_up[I:]
    w_down_t = w_down.T               # (I, H)
    if I_pad != I:
        pad_c = ((0, 0), (0, I_pad - I))
        gate_w = jnp.pad(gate_w, pad_c)
        up_w = jnp.pad(up_w, pad_c)
        gate_b = jnp.pad(gate_b, (0, I_pad - I))
        up_b = jnp.pad(up_b, (0, I_pad - I))
        w_down_t = jnp.pad(w_down_t, ((0, I_pad - I), (0, 0)))

    w_gate_up_t = jnp.concatenate([gate_w, up_w], axis=1)          # (H, 2*I_pad)
    b_gate_up_r = jnp.concatenate([gate_b, up_b]).reshape(1, 2 * I_pad)
    b_down_r = b_down.reshape(1, H)
    return w_gate_up_t, b_gate_up_r, w_down_t, b_down_r


# --------------------------------------------------------------------------
# Wrapper
# --------------------------------------------------------------------------
def gated_mlp(x, w_gate_up_t, b_gate_up_r, w_down_t, b_down_r, *,
              block_t=None, block_i=None, weight_buffers=2):
    """Fused GatedMLP forward on prepared (transposed, padded) parameters.

    x:            [..., H]
    w_gate_up_t:  [H, 2*I_pad]   from prepare_gated_mlp_params
    b_gate_up_r:  [1, 2*I_pad]
    w_down_t:     [I_pad, H]
    b_down_r:     [1, H]
    weight_buffers: 2 (default) or 3 — deeper weight pipelining when VMEM
                    headroom allows (v5e/v6e first; sweep 2 vs 3).
    """
    orig_shape = x.shape
    H = orig_shape[-1]
    x2 = x.reshape(-1, H)
    T = x2.shape[0]
    assert w_gate_up_t.shape[0] == H and w_down_t.shape[1] == H
    I = w_gate_up_t.shape[1] // 2
    assert w_down_t.shape[0] == I

    x_item = jnp.dtype(x.dtype).itemsize
    w_item = jnp.dtype(w_gate_up_t.dtype).itemsize
    mult = 16 if x_item == 2 else 8

    # --- VMEM budget, re-derived per chip (64 MiB/TC v7x, 128 MiB v5e/v6e) ---
    try:
        phys_vmem = pltpu.get_tpu_info().vmem_capacity_bytes
    except Exception:
        phys_vmem = 64 * 1024 * 1024    # conservative fallback (v7x-sized)
    budget = int(phys_vmem * 0.70)

    # --- joint (block_t, block_i) selection against the budget ---
    if block_t is None or block_i is None:
        bt, bi = _select_blocks(T, H, I, x_item, w_item, budget, mult,
                                weight_buffers)
        if block_t is None:
            block_t = bt
        if block_i is None:
            block_i = bi

    # Guarantee >= 2 token tiles when T permits (v7x: 2 TensorCores share the
    # "parallel" T axis; a single t-tile would idle one core).
    if (T + block_t - 1) // block_t == 1 and T >= 2 * mult:
        block_t = max(mult, _align_up((T + 1) // 2, mult))

    assert I % block_i == 0, "block_i must divide the (padded) intermediate size"
    assert block_i % 128 == 0 or block_i == I, "block_i must be a 128 multiple"
    assert block_t % 8 == 0 or block_t >= T, "block_t must be a multiple of 8"
    n_i = I // block_i
    n_t = (T + block_t - 1) // block_t

    # --- VMEM limit: fail loudly instead of silently clamping ---
    est = _vmem_step_bytes(block_t, block_i, H, w_item, x_item, weight_buffers)
    if est > int(phys_vmem * 0.95):
        raise ValueError(
            f"GatedMLP VMEM working set ~{est / 2**20:.1f} MiB exceeds this "
            f"chip's VMEM ({phys_vmem / 2**20:.0f} MiB); shrink block_t/"
            f"block_i or weight_buffers.")
    vmem_limit = min(int(phys_vmem * 0.98), max(32 << 20, est + (8 << 20)))

    # --- advisory cost estimate (helps XLA schedule surrounding ops) ---
    cost = pl.CostEstimate(
        flops=int(6 * T * I * H),
        transcendentals=int(T * I),
        bytes_accessed=int(2 * T * H * x_item
                           + n_t * (3 * I * H + 2 * I + H) * w_item))

    grid = (n_t, n_i)

    out2 = pl.pallas_call(
        _gated_mlp_kernel,
        out_shape=jax.ShapeDtypeStruct((T, H), x.dtype),
        grid_spec=pltpu.PrefetchScalarGridSpec(
            num_scalar_prefetch=0,
            grid=grid,
            in_specs=[
                pl.BlockSpec((block_t, H), lambda t, i: (t, 0)),          # x tile
                _weight_spec((H, block_i), lambda t, i: (0, i),           # gate W
                             weight_buffers),
                _weight_spec((H, block_i), lambda t, i: (0, i + n_i),     # up W
                             weight_buffers),
                pl.BlockSpec((1, block_i), lambda t, i: (0, i)),          # gate b
                pl.BlockSpec((1, block_i), lambda t, i: (0, i + n_i)),    # up b
                _weight_spec((block_i, H), lambda t, i: (i, 0),           # down W
                             weight_buffers),
                pl.BlockSpec((1, H), lambda t, i: (0, 0)),                # down b
            ],
            out_specs=pl.BlockSpec((block_t, H), lambda t, i: (t, 0)),
            scratch_shapes=[pltpu.VMEM((block_t, H), jnp.float32)],
        ),
        compiler_params=pltpu.CompilerParams(
            dimension_semantics=("parallel", "arbitrary"),
            vmem_limit_bytes=vmem_limit,
        ),
        cost_estimate=cost,
    )(x2, w_gate_up_t, w_gate_up_t, b_gate_up_r, b_gate_up_r,
      w_down_t, b_down_r)

    return out2.reshape(orig_shape)


# --------------------------------------------------------------------------
# Pure-JAX reference (mirrors the PyTorch forward)
# --------------------------------------------------------------------------
def gated_mlp_ref(x, w_gate_up, b_gate_up, w_down, b_down):
    """f32 math on the same low-precision inputs, with the same
    h -> input-dtype cast as the kernel."""
    xf = x.astype(jnp.float32)
    gu = xf @ w_gate_up.astype(jnp.float32).T + b_gate_up.astype(jnp.float32)
    I = gu.shape[-1] // 2
    gate, up = gu[:, :I], gu[:, I:]
    h = jax.nn.silu(gate) * up
    h = h.astype(x.dtype).astype(jnp.float32)
    out = h @ w_down.astype(jnp.float32).T + b_down.astype(jnp.float32)
    return out.astype(x.dtype)


if __name__ == "__main__":
    # Small, TPU-friendly shapes consistent with the module; bf16 exercises the
    # recommended MXU path (f32 accumulation inside the kernel).
    seq = 32           # number of tokens (flattened batch*seq)
    hidden = 128       # hidden_size
    inter = 256        # intermediate_size
    dtype = jnp.bfloat16

    key = jax.random.PRNGKey(0)
    kx, kw1, kb1, kw2, kb2 = jax.random.split(key, 5)

    x = jax.random.normal(kx, (seq, hidden), jnp.float32).astype(dtype)
    # Parameter shapes follow nn.Linear: weight [out, in], bias [out].
    w_gate_up = (jax.random.normal(kw1, (2 * inter, hidden), jnp.float32) * 0.05).astype(dtype)
    b_gate_up = (jax.random.normal(kb1, (2 * inter,), jnp.float32) * 0.05).astype(dtype)
    w_down = (jax.random.normal(kw2, (hidden, inter), jnp.float32) * 0.05).astype(dtype)
    b_down = (jax.random.normal(kb2, (hidden,), jnp.float32) * 0.05).astype(dtype)

    # One-time param prep: transpose to canonical layout (+ pad I if needed).
    params = prepare_gated_mlp_params(w_gate_up, b_gate_up, w_down, b_down,
                                      i_multiple=256)

    ref = gated_mlp_ref(x, w_gate_up, b_gate_up, w_down, b_down)

    # 1) Auto-tiled run (heuristic picks block_t/block_i; >=2 t-tiles rule fires).
    out_auto = jax.block_until_ready(gated_mlp(x, *params))
    assert out_auto.shape == (seq, hidden)
    err = jnp.max(jnp.abs(out_auto.astype(jnp.float32) - ref.astype(jnp.float32)))
    assert float(err) < 2e-2, f"auto-tiled mismatch: max abs err = {float(err)}"

    # 2) Explicit small tiles so both grid axes are exercised even at toy sizes
    #    (multi-step I reduction with accumulator init/finalize + parallel T).
    out_small = jax.block_until_ready(
        gated_mlp(x, *params, block_t=16, block_i=128))
    err = jnp.max(jnp.abs(out_small.astype(jnp.float32) - ref.astype(jnp.float32)))
    assert float(err) < 2e-2, f"small-tile mismatch: max abs err = {float(err)}"

    print("KERNEL_OK")
</pallas_src>

<mosaic_0001>
module attributes {stable_mosaic.version = 11 : i64} {
  func.func @_gated_mlp_kernel(%arg0: i32, %arg1: i32, %arg2: memref<16x128xbf16, #tpu.memory_space<vmem>>, %arg3: memref<128x256xbf16, #tpu.memory_space<vmem>>, %arg4: memref<128x256xbf16, #tpu.memory_space<vmem>>, %arg5: memref<1x256xbf16, #tpu.memory_space<vmem>>, %arg6: memref<1x256xbf16, #tpu.memory_space<vmem>>, %arg7: memref<256x128xbf16, #tpu.memory_space<vmem>>, %arg8: memref<1x128xbf16, #tpu.memory_space<vmem>>, %arg9: memref<16x128xbf16, #tpu.memory_space<vmem>>, %arg10: memref<16x128xf32, #tpu.memory_space<vmem>>) attributes {dimension_semantics = [#tpu.dimension_semantics<parallel>, #tpu.dimension_semantics<arbitrary>], iteration_bounds = array<i64: 2, 1>, scalar_prefetch = 0 : i64, scratch_operands = 1 : i64, tpu.core_type = #tpu.core_type<tc>, window_params = [{transform_indices = @transform_0, window_bounds = array<i64: 16, 128>}, {transform_indices = @transform_1, window_bounds = array<i64: 128, 256>}, {transform_indices = @transform_2, window_bounds = array<i64: 128, 256>}, {transform_indices = @transform_3, window_bounds = array<i64: 1, 256>}, {transform_indices = @transform_4, window_bounds = array<i64: 1, 256>}, {transform_indices = @transform_5, window_bounds = array<i64: 256, 128>}, {pipeline_mode = #tpu.pipeline_mode<synchronous>, transform_indices = @transform_6, window_bounds = array<i64: 1, 128>}, {transform_indices = @transform_7, window_bounds = array<i64: 16, 128>}]} {
    %c0_i32 = arith.constant 0 : i32
    %0 = arith.cmpi eq, %arg1, %c0_i32 : i32
    %1 = arith.extui %0 : i1 to i32
    %c0_i32_0 = arith.constant 0 : i32
    %2 = arith.cmpi ne, %1, %c0_i32_0 : i32
    scf.if %2 {
      %cst_21 = arith.constant 0.000000e+00 : f32
      %32 = vector.broadcast %cst_21 : f32 to vector<16x128xf32>
      %c0_22 = arith.constant 0 : index
      %c0_23 = arith.constant 0 : index
      %33 = vector.load %arg10[%c0_22, %c0_23] : memref<16x128xf32, #tpu.memory_space<vmem>>, vector<16x128xf32>
      tpu.vector_store %arg10[%c0_22, %c0_23], %32 {strides = array<i32>} : memref<16x128xf32, #tpu.memory_space<vmem>>, vector<16x128xf32>,
    } else {
    }
    %c0 = arith.constant 0 : index
    %c0_1 = arith.constant 0 : index
    %3 = vector.load %arg2[%c0, %c0_1] : memref<16x128xbf16, #tpu.memory_space<vmem>>, vector<16x128xbf16>
    %c0_2 = arith.constant 0 : index
    %c0_3 = arith.constant 0 : index
    %4 = vector.load %arg3[%c0_2, %c0_3] : memref<128x256xbf16, #tpu.memory_space<vmem>>, vector<128x256xbf16>
    %cst = arith.constant dense<0.000000e+00> : vector<16x256xf32>
    %5 = tpu.matmul %3, %4, %cst {dimension_numbers = #tpu.dot_dimension_numbers<[1], [0], [0], [1], [0, 0, 1, 1], [], []>} : vector<16x128xbf16>, vector<128x256xbf16>, vector<16x256xf32> -> vector<16x256xf32>
    %c0_4 = arith.constant 0 : index
    %c0_5 = arith.constant 0 : index
    %6 = vector.load %arg5[%c0_4, %c0_5] : memref<1x256xbf16, #tpu.memory_space<vmem>>, vector<1x256xbf16>
    %7 = arith.extf %6 : vector<1x256xbf16> to vector<1x256xf32>
    %8 = vector.broadcast %7 : vector<1x256xf32> to vector<16x256xf32>
    %9 = arith.addf %5, %8 : vector<16x256xf32>
    %c0_6 = arith.constant 0 : index
    %c0_7 = arith.constant 0 : index
    %10 = vector.load %arg4[%c0_6, %c0_7] : memref<128x256xbf16, #tpu.memory_space<vmem>>, vector<128x256xbf16>
    %cst_8 = arith.constant dense<0.000000e+00> : vector<16x256xf32>
    %11 = tpu.matmul %3, %10, %cst_8 {dimension_numbers = #tpu.dot_dimension_numbers<[1], [0], [0], [1], [0, 0, 1, 1], [], []>} : vector<16x128xbf16>, vector<128x256xbf16>, vector<16x256xf32> -> vector<16x256xf32>
    %c0_9 = arith.constant 0 : index
    %c0_10 = arith.constant 0 : index
    %12 = vector.load %arg6[%c0_9, %c0_10] : memref<1x256xbf16, #tpu.memory_space<vmem>>, vector<1x256xbf16>
    %13 = arith.extf %12 : vector<1x256xbf16> to vector<1x256xf32>
    %14 = vector.broadcast %13 : vector<1x256xf32> to vector<16x256xf32>
    %15 = arith.addf %11, %14 : vector<16x256xf32>
    %16 = arith.negf %9 : vector<16x256xf32>
    %17 = math.exp %16 : vector<16x256xf32>
    %cst_11 = arith.constant 1.000000e+00 : f32
    %18 = vector.broadcast %cst_11 : f32 to vector<16x256xf32>
    %19 = arith.addf %18, %17 : vector<16x256xf32>
    %20 = arith.divf %18, %19 : vector<16x256xf32>
    %21 = arith.mulf %9, %20 : vector<16x256xf32>
    %22 = arith.mulf %21, %15 : vector<16x256xf32>
    %c0_12 = arith.constant 0 : index
    %c0_13 = arith.constant 0 : index
    %23 = vector.load %arg10[%c0_12, %c0_13] : memref<16x128xf32, #tpu.memory_space<vmem>>, vector<16x128xf32>
    %24 = arith.truncf %22 : vector<16x256xf32> to vector<16x256xbf16>
    %c0_14 = arith.constant 0 : index
    %c0_15 = arith.constant 0 : index
    %25 = vector.load %arg7[%c0_14, %c0_15] : memref<256x128xbf16, #tpu.memory_space<vmem>>, vector<256x128xbf16>
    %cst_16 = arith.constant dense<0.000000e+00> : vector<16x128xf32>
    %26 = tpu.matmul %24, %25, %cst_16 {dimension_numbers = #tpu.dot_dimension_numbers<[1], [0], [0], [1], [0, 0, 1, 1], [], []>} : vector<16x256xbf16>, vector<256x128xbf16>, vector<16x128xf32> -> vector<16x128xf32>
    %27 = arith.addf %23, %26 : vector<16x128xf32>
    %c0_17 = arith.constant 0 : index
    %c0_18 = arith.constant 0 : index
    %28 = vector.load %arg10[%c0_17, %c0_18] : memref<16x128xf32, #tpu.memory_space<vmem>>, vector<16x128xf32>
    tpu.vector_store %arg10[%c0_17, %c0_18], %27 {strides = array<i32>} : memref<16x128xf32, #tpu.memory_space<vmem>>, vector<16x128xf32>,
    %c0_i32_19 = arith.constant 0 : i32
    %29 = arith.cmpi eq, %arg1, %c0_i32_19 : i32
    %30 = arith.extui %29 : i1 to i32
    %c0_i32_20 = arith.constant 0 : i32
    %31 = arith.cmpi ne, %30, %c0_i32_20 : i32
    scf.if %31 {
      %c0_21 = arith.constant 0 : index
      %c0_22 = arith.constant 0 : index
      %32 = vector.load %arg10[%c0_21, %c0_22] : memref<16x128xf32, #tpu.memory_space<vmem>>, vector<16x128xf32>
      %c0_23 = arith.constant 0 : index
      %c0_24 = arith.constant 0 : index
      %33 = vector.load %arg8[%c0_23, %c0_24] : memref<1x128xbf16, #tpu.memory_space<vmem>>, vector<1x128xbf16>
      %34 = arith.extf %33 : vector<1x128xbf16> to vector<1x128xf32>
      %35 = vector.broadcast %34 : vector<1x128xf32> to vector<16x128xf32>
      %36 = arith.addf %32, %35 : vector<16x128xf32>
      %37 = arith.truncf %36 : vector<16x128xf32> to vector<16x128xbf16>
      %c0_25 = arith.constant 0 : index
      %c0_26 = arith.constant 0 : index
      %38 = vector.load %arg9[%c0_25, %c0_26] : memref<16x128xbf16, #tpu.memory_space<vmem>>, vector<16x128xbf16>
      tpu.vector_store %arg9[%c0_25, %c0_26], %37 {strides = array<i32>} : memref<16x128xbf16, #tpu.memory_space<vmem>>, vector<16x128xbf16>,
    } else {
    }
    return
  }
  func.func @transform_0(%arg0: i32, %arg1: i32) -> (i32, i32) {
    %c0_i32 = arith.constant 0 : i32
    %c0_i32_0 = arith.constant 0 : i32
    return %arg0, %c0_i32 : i32, i32
  }
  func.func @transform_1(%arg0: i32, %arg1: i32) -> (i32, i32) {
    %c0_i32 = arith.constant 0 : i32
    %c0_i32_0 = arith.constant 0 : i32
    return %c0_i32, %arg1 : i32, i32
  }
  func.func @transform_2(%arg0: i32, %arg1: i32) -> (i32, i32) {
    %c1_i32 = arith.constant 1 : i32
    %0 = arith.addi %arg1, %c1_i32 : i32
    %c0_i32 = arith.constant 0 : i32
    %c0_i32_0 = arith.constant 0 : i32
    return %c0_i32, %0 : i32, i32
  }
  func.func @transform_3(%arg0: i32, %arg1: i32) -> (i32, i32) {
    %c0_i32 = arith.constant 0 : i32
    %c0_i32_0 = arith.constant 0 : i32
    return %c0_i32, %arg1 : i32, i32
  }
  func.func @transform_4(%arg0: i32, %arg1: i32) -> (i32, i32) {
    %c1_i32 = arith.constant 1 : i32
    %0 = arith.addi %arg1, %c1_i32 : i32
    %c0_i32 = arith.constant 0 : i32
    %c0_i32_0 = arith.constant 0 : i32
    return %c0_i32, %0 : i32, i32
  }
  func.func @transform_5(%arg0: i32, %arg1: i32) -> (i32, i32) {
    %c0_i32 = arith.constant 0 : i32
    %c0_i32_0 = arith.constant 0 : i32
    return %arg1, %c0_i32 : i32, i32
  }
  func.func @transform_6(%arg0: i32, %arg1: i32) -> (i32, i32) {
    %c0_i32 = arith.constant 0 : i32
    %c0_i32_0 = arith.constant 0 : i32
    %c0_i32_1 = arith.constant 0 : i32
    return %c0_i32, %c0_i32_0 : i32, i32
  }
  func.func @transform_7(%arg0: i32, %arg1: i32) -> (i32, i32) {
    %c0_i32 = arith.constant 0 : i32
    %c0_i32_0 = arith.constant 0 : i32
    return %arg0, %c0_i32 : i32, i32
  }
}

</mosaic_0001>

<bundles_post_ra>
// kernel: tpu_custom_call.1
= control target key start
LH: loop header
LB: loop body
LE: loop exit
PB: predicated region body
PF: predicated region fallthrough
CT: control target
= control target key end

     0   :  { %s2023_s0 = inlined_call_operand.hbm [shape: bf16[32,128], index: 0, kind: input, shape index: {}]   ;;  %s2024_s1 = inlined_call_operand.hbm [shape: bf16[128,512], index: 1, kind: input, shape index: {}]   ;;  %s2025_s2 = inlined_call_operand.hbm [shape: bf16[128,512], index: 2, kind: input, shape index: {}]   ;;  %s2026_s3 = inlined_call_operand.vmem [shape: bf16[1,512], index: 3, kind: input, shape index: {}]   ;;  %s2027_s4 = inlined_call_operand.vmem [shape: bf16[1,512], index: 4, kind: input, shape index: {}]   ;;  %s2028_s5 = inlined_call_operand.hbm [shape: bf16[256,128], index: 5, kind: input, shape index: {}]   ;;  %s2029_s6 = inlined_call_operand.vmem [shape: bf16[1,128], index: 6, kind: input, shape index: {}]   ;;  %s2030_s7 = inlined_call_operand.hbm [shape: bf16[32,128], index: 7, kind: output, shape index: {}]  }
   0x1   :  { %2042 = sst [smem:[#allocation20_spill]] %s2026_s3 }
   0x2   :  { %2043 = sst [smem:[#allocation21_spill]] %s2027_s4 }
   0x3   :  { %2044 = sst [smem:[#allocation22_spill]] %s2029_s6 }
   0x4   :  { %2045 = sst [smem:[#allocation23_spill]] %s2030_s7 }
   0x5   :  { %12 = vsyncpa [#allocation4], 0 }
   0x6   :  { %14 = vsyncpa [#allocation4 + $0x1], 0 }
   0x7   :  { %15 = vsyncpa [#allocation7], 0 }
   0x8   :  { %16 = vsyncpa [#allocation10], 0 }
   0x9   :  { %17 = vsyncpa [#allocation5], 0 }
   0xa   :  { %19 = vsyncpa [#allocation5 + $0x1], 0  ;;  %s1707_s24 = smov 0   ;;  %s1709_s25 = smov 0  }
   0xb   :  { %s1711_s26 = smov 0   ;;  %s1713_s27 = smov 0  }
   0xc   :  { %s1715_s28 = smov 0   ;;  %s1717_s29 = smov 0  }
   0xd LB: > { %2046 = sst [smem:[#allocation16_spill]] %s1632_s24  ;;  %s1153_s30 = sadd.s32 4294967295, %s1652_s29   ;;  %s1652_s29 = sphi %s1717_s29, %s25_s29   ;;  %s1648_s28 = sphi %s1715_s28, %s2079_s28   ;;  %s1644_s27 = sphi %s1713_s27, %s2078_s27   ;;  %s1640_s26 = sphi %s1711_s26, %s2077_s26   ;;  %s1636_s25 = sphi %s1709_s25, %s2076_s25   ;;  %s1632_s24 = sphi %s1707_s24, %s2075_s24  }
   0xe   : > { %2047 = sst [smem:[#allocation17_spill]] %s1644_s27  ;;  %s1154_s8 = sadd.s32 4294967294, %s1652_s29  }
   0xf   : > { %p57_p0 = scmp.ne.s32.totalorder %s1636_s25, %s1632_s24  ;;  %p1741_p1 = scmp.eq.s32.totalorder %s1153_s30, 0 }
  0x10   : > { %p1745_p2 = scmp.eq.s32.totalorder %s1153_s30, 1  ;;  %p242_p3 = scmp.eq.s32.totalorder %s1154_s8, 1 }
  0x11   : > { %s2048_s9 = scalar_select %p1741_p1, 1, 0 }
  0x12   : > { %s2050_s10 = scalar_select %p1745_p2, 1, 0 }
  0x13   : > { %2049 = sst [smem:[#allocation18_spill]] %s2048_s9  ;;  %p1751_p4 = por %p1741_p1, %p57_p0 }
  0x14   : > { %p1155_p5 = scmp.ge.s32.totalorder %s1652_s29, 1  ;;  %p1756_p6 = por %p242_p3, %p57_p0 }
  0x15   : > { %s2051_s11 = scalar_select %p1751_p4, 1, 0 }
  0x16   : > { %s2052_s12 = scalar_select %p1756_p6, 1, 0 }
  0x17   : > { %p249_p7 = scmp.lt.s32.totalorder %s1652_s29, 3  ;;  %s1654_s14 = smov [#allocation6]  }
  0x18   : > { %2053 = sst [smem:[#allocation19_spill]] %s2052_s12  ;;  %s264_s15 = sshll.u32 %s1654_s14, 4  ;;  %s1765_s15 = int_to_ptr.vmem [resolvable:$true] %s264_s15 }
  0x19   : > { %p1761_p8 = pnand %p1155_p5, %p249_p7  ;;  %s1779_s19 = scalar_lea.hbm %s2025_s2, 128 }
  0x1a   : > { %s1655_s20 = smov [#allocation8]   ;;  %s1445_s30 = scalar_lea.hbm %s2024_s1, 2048 }
  0x1b   : > { %s2054_s13 = scalar_select %p1761_p8, 1, 0 }
  0x1c   : > { %p1279_p9 = pneg %p1761_p8  ;;  %s281_s21 = sshll.u32 %s1655_s20, 4  ;;  %s282_s21 = int_to_ptr.vmem [resolvable:$true] %s281_s21 }
  0x1d   : > { %p1446_p12 = scmp.ne.s32.totalorder %s2024_s1, %s1445_s30  ;;  %s1450_s20 = scalar_lea.hbm %s2024_s1, 4096 }
  0x1e   : > { %p1772_p11 = pnand %p1279_p9, %p1741_p1  ;;  %p1451_p5 = scmp.lt.u32.totalorder %s1450_s20, %s1445_s30 }
  0x1f   : > { %p1452_p7 = scmp.lt.u32.totalorder %s1445_s30, %s2024_s1 }
  0x20   : > { %s2055_s16 = scalar_select %p1772_p11, 1, 0 }
  0x21   : > { %p1789_p13 = pneg %p1772_p11  ;;  %p1453_p9 = por %p1452_p7, %p1451_p5 }
  0x23   : > { %p1448_p0 = pnand %p1789_p13, %p1446_p12 }
  0x25   : > { %p1449_p3 = pneg %p1448_p0 }
  0x27   : > { %p1454_p10 = pnand %p1453_p9, %p1449_p3 }
  0x29   : > { %1457 = shalt.err (!%p1454_p10)
}
  0x2a   : > { %s1458_s8 = scalar_lea.vmem %s1765_s15, 2048  ;;  %p1466_p1 = scmp.lt.s32.totalorder %s1765_s15, %s1765_s15 }
  0x2b   : > { %p1459_p6 = scmp.ne.s32.totalorder %s1765_s15, %s1458_s8  ;;  %p1467_p4 = scmp.lt.s32.totalorder %s1458_s8, %s1458_s8 }
  0x2d   : > { %p1461_p12 = pnand %p1459_p6, %p1789_p13  ;;  %p1468_p8 = por %p1467_p4, %p1466_p1 }
  0x2f   : > { %p1462_p0 = pneg %p1461_p12 }
  0x31   : > { %p1469_p2 = pnand %p1468_p8, %p1462_p0 }
  0x33   : > { %1472 = shalt.err (!%p1469_p2)
}
  0x34   : > { %s1656_s14 = smov 256   ;;  %s1657_s30 = smov 128  }
  0x35   : > { %s1658_s17 = smov 8   ;;  %s1659_s22 = smov [#allocation9]  }
  0x36   : > { %1282 = dma.hbm_to_vmem [thread:$0]  (!%p1772_p11), %s2024_s1, 2048, %s1765_s15, [#allocation7], %s1656_s14, %s1657_s30, %s1658_s17  }
  0x37   : > { %s315_s23 = sshll.u32 %s1659_s22, 4  ;;  %s1503_s7 = scalar_lea.hbm %s2025_s2, 2176  ;;  %s316_s23 = int_to_ptr.vmem [resolvable:$true] %s315_s23 }
  0x38   : > { %p1474_p1 = scmp.ne.s32.totalorder %s1779_s19, %s1503_s7  ;;  %s1478_s4 = scalar_lea.hbm %s2025_s2, 4096 }
  0x39   : > { %p1479_p6 = scmp.lt.u32.totalorder %s1779_s19, %s2025_s2  ;;  %p1480_p8 = scmp.lt.u32.totalorder %s1478_s4, %s1503_s7 }
  0x3a   : > { %p1476_p2 = pnand %p1474_p1, %p1789_p13  ;;  %p1482_p3 = scmp.lt.u32.totalorder %s1503_s7, %s1779_s19 }
  0x3b   : > { %p1481_p10 = por %p1480_p8, %p1479_p6 }
  0x3c   : > { %p1477_p4 = pneg %p1476_p2 }
  0x3d   : > { %p1483_p5 = por %p1482_p3, %p1481_p10 }
  0x3f   : > { %p1484_p7 = pnand %p1483_p5, %p1477_p4 }
  0x41   : > { %1487 = shalt.err (!%p1484_p7)
}
  0x42   : > { %s1488_s24 = scalar_lea.vmem %s282_s21, 2048  ;;  %p1496_p1 = scmp.lt.s32.totalorder %s282_s21, %s282_s21 }
  0x43   : > { %p1489_p9 = scmp.ne.s32.totalorder %s282_s21, %s1488_s24  ;;  %p1497_p2 = scmp.lt.s32.totalorder %s1488_s24, %s1488_s24 }
  0x45   : > { %p1491_p12 = pnand %p1489_p9, %p1789_p13  ;;  %p1498_p11 = por %p1497_p2, %p1496_p1 }
  0x47   : > { %p1492_p0 = pneg %p1491_p12 }
  0x49   : > { %p1499_p6 = pnand %p1498_p11, %p1492_p0 }
  0x4b   : > { %1502 = shalt.err (!%p1499_p6)
}
  0x4c   : > { %p2057_p8 = scmp.ne.s32.totalorder %s2055_s16, 0  ;;  %s1504_s6 = scalar_lea.hbm %s2028_s5, 2048 }
  0x4d   : > { %p1505_p4 = scmp.ne.s32.totalorder %s2028_s5, %s1504_s6  ;;  %p1511_p3 = scmp.lt.u32.totalorder %s1504_s6, %s2028_s5 }
  0x4e   : > { %1285 = dma.hbm_to_vmem [thread:$0]  (!%p2057_p8), %s1779_s19, 2048, %s282_s21, [#allocation7], %s1656_s14, %s1657_s30, %s1658_s17  }
  0x4f   : > { %p1507_p11 = pnand %p1505_p4, %p1789_p13 }
  0x51   : > { %p1508_p10 = pneg %p1507_p11 }
  0x53   : > { %p1513_p5 = pnand %p1511_p3, %p1508_p10 }
  0x55   : > { %1516 = shalt.err (!%p1513_p5)
}
  0x56   : > { %s1517_s18 = scalar_lea.vmem %s316_s23, 2048  ;;  %p1525_p0 = scmp.lt.s32.totalorder %s316_s23, %s316_s23 }
  0x57   : > { %p1518_p7 = scmp.ne.s32.totalorder %s316_s23, %s1517_s18  ;;  %p1526_p1 = scmp.lt.s32.totalorder %s1517_s18, %s1517_s18 }
  0x59   : > { %p1520_p9 = pnand %p1518_p7, %p1789_p13  ;;  %p1527_p2 = por %p1526_p1, %p1525_p0 }
  0x5b   : > { %p1521_p12 = pneg %p1520_p9 }
  0x5d   : > { %p1528_p6 = pnand %p1527_p2, %p1521_p12 }
  0x5f   : > { %1531 = shalt.err (!%p1528_p6)
}
  0x60   : > { %s1660_s19 = smov 64   ;;  %s1661_s12 = smov 4  }
  0x61   : > { %1288 = dma.hbm_to_vmem [thread:$0]  (!%p2057_p8), %s2028_s5, 2048, %s316_s23, [#allocation10], %s1660_s19, %s1660_s19, %s1661_s12  }
  0x62   : > { %s44_s30 = sadd.s32 1, %s1640_s26  ;;  %s37_s17 = sadd.s32 1, %s1648_s28 }
  0x63   : > { %p51_p13 = scmp.ne.s32.totalorder %s1640_s26, %s1636_s25  ;;  %p39_p4 = scmp.ge.s32.totalorder %s37_s17, 2 }
  0x64   : > { %p52_p11 = scmp.eq.s32.totalorder %s1652_s29, 0  ;;  %p2058_p10 = scmp.ne.s32.totalorder %s2050_s10, 0 }
  0x65   : > { %p1300_p5 = scmp.lt.s32.totalorder %s1652_s29, 2  ;;  %s2081_s17 = smov (%p39_p4, %s37_s17), 0 }
  0x66   : > { %p1866_p3 = por %p2058_p10, %p51_p13  ;;  %p53_p7 = por %p52_p11, %p51_p13 }
  0x67   : > { %s332_s16 = sand.u32 1, %s1640_s26   ;;  %s41_s22 = ssub.s32 %s1648_s28, %s2081_s17 }
  0x68   : > { %p42_p9 = scmp.eq.s32.totalorder %s41_s22, 0  ;;  %s1162_s23 = sshll.u32 %s332_s16, 3 }
  0x69   : > { %s1232_s8 = sshll.u32 %s1648_s28, 7  ;;  %s336_s6 = scalar_lea.vmem [#allocation3], %s1162_s23 }
  0x6a   : > { %s1878_s24 = scalar_select %p42_p9, %s1640_s26, %s44_s30  }
  0x6b   : > { %s1883_s10 = scalar_lea.hbm %s2023_s0, %s1232_s8  ;;  %s343_s7 = sshll.u32 %s336_s6, 4  ;;  %s1885_s7 = int_to_ptr.vmem [resolvable:$true] %s343_s7 }
  0x6c   : > { %p1889_p8 = pnand %p1300_p5, %p53_p7  ;;  %s1893_s9 = scalar_lea.sflag [#allocation4], %s332_s16 }
  0x6d   : > { %s1532_s15 = scalar_lea.hbm %s1883_s10, 128  ;;  %s1537_s14 = scalar_lea.hbm %s2023_s0, 256 }
  0x6e   : > { %p1533_p12 = scmp.ne.s32.totalorder %s1883_s10, %s1532_s15  ;;  %p1534_p0 = pneg %p1889_p8 }
  0x6f   : > { %p1538_p6 = scmp.lt.u32.totalorder %s1883_s10, %s2023_s0  ;;  %p1539_p13 = scmp.lt.u32.totalorder %s1537_s14, %s1532_s15 }
  0x70   : > { %p1535_p1 = pnand %p1534_p0, %p1533_p12  ;;  %p1541_p11 = scmp.lt.u32.totalorder %s1532_s15, %s1883_s10 }
  0x71   : > { %p1540_p4 = por %p1539_p13, %p1538_p6 }
  0x72   : > { %p1536_p2 = pneg %p1535_p1 }
  0x73   : > { %p1542_p10 = por %p1541_p11, %p1540_p4 }
  0x75   : > { %p1543_p5 = pnand %p1542_p10, %p1536_p2 }
  0x77   : > { %1546 = shalt.err (!%p1543_p5)
}
  0x78   : > { %s1547_s16 = scalar_lea.vmem %s1885_s7, 128  ;;  %s1662_s23 = smov [#allocation3]  }
  0x79   : > { %p1548_p7 = scmp.ne.s32.totalorder %s1885_s7, %s1547_s16  ;;  %s1552_s8 = sshll.u32 %s1662_s23, 4  ;;  %s1553_s8 = int_to_ptr.vmem [resolvable:$false] %s1552_s8 }
  0x7a   : > { %s1554_s3 = scalar_lea.vmem %s1553_s8, 256  ;;  %p1555_p1 = scmp.lt.s32.totalorder %s1885_s7, %s1553_s8 }
  0x7b   : > { %p1550_p9 = pnand %p1548_p7, %p1534_p0  ;;  %p1556_p6 = scmp.lt.s32.totalorder %s1554_s3, %s1547_s16 }
  0x7d   : > { %p1551_p12 = pneg %p1550_p9  ;;  %p1557_p13 = por %p1556_p6, %p1555_p1 }
  0x7f   : > { %p1558_p4 = pnand %p1557_p13, %p1551_p12 }
  0x81   : > { %1561 = shalt.err (!%p1558_p4)
}
  0x82   : > { %1292 = dma.hbm_to_vmem [thread:$0]  (!%p1889_p8), %s1883_s10, 128, %s1885_s7, %s1893_s9, %s1660_s19, %s1660_s19, %s1661_s12  }
  0x83   : > { %p2061_p0 = scmp.ne.s32.totalorder %s2054_s13, 0 }
  0x84   : > { %s1927_s4 = sand.u32 (!%p2061_p0), 1, %s1636_s25   ;;  %p2062_p2 = scmp.ne.s32.totalorder (!%p2061_p0), %s2051_s11, 0 }
  0x85   : > { %355 = sbr.rel (%p2061_p0) target bundleno = 672 (0x2a0), region = 48  ;;  %s1166_s6 = sshll.u32 (!%p2061_p0), %s1927_s4, 3 }
  0x86   : > { %s358_s15 = scalar_lea.sflag (!%p2061_p0), [#allocation4], %s1927_s4  ;;  %s1933_s27 = scalar_lea.vmem (!%p2061_p0), [#allocation3], %s1166_s6 }
  0x8c   : > { %1615 = dma.done.wait (%p2062_p2), %s358_s15, 128  }
  0x8d   : > { %1617 = vsyncadd (%p2062_p2), %s358_s15, 4294967168  ;;  %s2063_s19 = sld [smem:[#allocation18_spill]] }
  0x93   : > { %p2064_p8 = scmp.ne.s32.totalorder %s2063_s19, 0 }
  0x95   : > { %1619 = dma.done.wait (%p2064_p8), [#allocation7], 4096  }
  0x96   : > { %1621 = vsyncadd (%p2064_p8), [#allocation7], 4294963200 }
  0x97   : > { %1623 = dma.done.wait (%p2064_p8), [#allocation10], 2048  }
  0x98   : > { %1625 = vsyncadd (%p2064_p8), [#allocation10], 4294965248  ;;  %v1663_v0 = vmov 0   ;;  %v1364_v1 = vld [vmem:[#allocation6 + $0x4] ss:$8 sps:$4 sm:$0xff]   ;;  %v1394_v29 = vld [vmem:[%s1933_s27] sm:$0xff]   ;;  %v459_v50 = vlaneseq }
  0x99   : > { %595 = vmatprep.mubr.bf16.mxu0 %v1663_v0  ;;  %755 = vmatprep.mubr.bf16.mxu1 %v1663_v0  ;;  %v1366_v2 = vld [vmem:[#allocation6] ss:$8 sps:$4 sm:$0xff]   ;;  %v1367_v3 = vld [vmem:[#allocation6 + $0x14] ss:$8 sps:$4 sm:$0xff]   ;;  %v1369_v4 = vld [vmem:[#allocation6 + $0x10] ss:$8 sps:$4 sm:$0xff]  }
  0x9a   : > { %563 = vmatprep.subr.bf16.mxu0 %v1364_v1  ;;  %v1370_v5 = vld [vmem:[#allocation6 + $0x24] ss:$8 sps:$4 sm:$0xff]   ;;  %v1372_v6 = vld [vmem:[#allocation6 + $0x20] ss:$8 sps:$4 sm:$0xff]   ;;  %v1373_v7 = vld [vmem:[#allocation6 + $0x34] ss:$8 sps:$4 sm:$0xff]  }
  0x9b   : > { %564 = vmatpush1.bf16.msra.mxu0 %v1366_v2  ;;  %v1385_v8 = vld [vmem:[#allocation8 + $0x4] ss:$8 sps:$4 sm:$0xff]   ;;  %v1387_v9 = vld [vmem:[#allocation8] ss:$8 sps:$4 sm:$0xff]   ;;  %v1375_v10 = vld [vmem:[#allocation6 + $0x30] ss:$8 sps:$4 sm:$0xff]  }
  0x9c   : > { %565 = vmatprep.subr.bf16.mxu0 %v1367_v3  ;;  %v1376_v11 = vld [vmem:[#allocation6 + $0x44] ss:$8 sps:$4 sm:$0xff]   ;;  %723 = vmatprep.subr.bf16.mxu1 %v1385_v8  ;;  %v1391_v12 = vld [vmem:[#allocation8 + $0x14] ss:$8 sps:$4 sm:$0xff]   ;;  %v1393_v13 = vld [vmem:[#allocation8 + $0x10] ss:$8 sps:$4 sm:$0xff]  }
  0x9d   : > { %724 = vmatpush1.bf16.msra.mxu1 %v1387_v9  ;;  %v1378_v14 = vld [vmem:[#allocation6 + $0x40] ss:$8 sps:$4 sm:$0xff]   ;;  %v1395_v15 = vld [vmem:[#allocation8 + $0x24] ss:$8 sps:$4 sm:$0xff]   ;;  %v1379_v16 = vld [vmem:[#allocation6 + $0x54] ss:$8 sps:$4 sm:$0xff]  }
  0x9e   : > { %725 = vmatprep.subr.bf16.mxu1 %v1391_v12  ;;  %v1397_v17 = vld [vmem:[#allocation8 + $0x20] ss:$8 sps:$4 sm:$0xff]   ;;  %v1398_v18 = vld [vmem:[#allocation8 + $0x34] ss:$8 sps:$4 sm:$0xff]   ;;  %v1381_v19 = vld [vmem:[#allocation6 + $0x50] ss:$8 sps:$4 sm:$0xff]  }
  0x9f   : > { %566 = vmatpush1.bf16.msra.mxu0 %v1369_v4  ;;  %v1382_v20 = vld [vmem:[#allocation6 + $0x64] ss:$8 sps:$4 sm:$0xff]   ;;  %v1384_v21 = vld [vmem:[#allocation6 + $0x60] ss:$8 sps:$4 sm:$0xff]   ;;  %v1400_v22 = vld [vmem:[#allocation8 + $0x30] ss:$8 sps:$4 sm:$0xff]  }
  0xa0   : > { %567 = vmatprep.subr.bf16.mxu0 %v1370_v5  ;;  %v1388_v23 = vld [vmem:[#allocation6 + $0x74] ss:$8 sps:$4 sm:$0xff]   ;;  %v1401_v24 = vld [vmem:[#allocation8 + $0x44] ss:$8 sps:$4 sm:$0xff]   ;;  %v1403_v25 = vld [vmem:[#allocation8 + $0x40] ss:$8 sps:$4 sm:$0xff]  }
  0xa1   : > { %726 = vmatpush1.bf16.msra.mxu1 %v1393_v13  ;;  %v1404_v26 = vld [vmem:[#allocation8 + $0x54] ss:$8 sps:$4 sm:$0xff]   ;;  %v1390_v27 = vld [vmem:[#allocation6 + $0x70] ss:$8 sps:$4 sm:$0xff]   ;;  %v1407_v30 = vld [vmem:[#allocation8 + $0x64] ss:$8 sps:$4 sm:$0xff]  }
  0xa2   : > { %727 = vmatprep.subr.bf16.mxu1 %v1395_v15  ;;  %v1406_v28 = vld [vmem:[#allocation8 + $0x50] ss:$8 sps:$4 sm:$0xff]   ;;  %v1409_v31 = vld [vmem:[#allocation8 + $0x60] ss:$8 sps:$4 sm:$0xff]   ;;  %v1410_v32 = vld [vmem:[#allocation8 + $0x74] ss:$8 sps:$4 sm:$0xff]  }
  0xa3   : > { %568 = vmatpush1.bf16.msra.mxu0 %v1372_v6  ;;  %v1412_v33 = vld [vmem:[#allocation8 + $0x70] ss:$8 sps:$4 sm:$0xff]   ;;  %v1413_v34 = vld [vmem:[#allocation9 + $0x40] sm:$0xff]   ;;  %v1415_v36 = vld [vmem:[#allocation9 + $0x48] sm:$0xff]   ;;  %v460_v51 = vshrl.u32 %v459_v50, 7  ;;  %s2065_s12 = sld [smem:[#allocation20_spill]] }
  0xa4   : > { %569 = vmatprep.subr.bf16.mxu0 %v1373_v7  ;;  %v1414_v35 = vld [vmem:[#allocation9] sm:$0xff]   ;;  %v1416_v37 = vld [vmem:[#allocation9 + $0x8] sm:$0xff]   ;;  %v1417_v38 = vld [vmem:[#allocation9 + $0x50] sm:$0xff]   ;;  %s2066_s9 = sld [smem:[#allocation21_spill]]  ;;  %s2067_s18 = sld [smem:[#allocation17_spill]] }
  0xa5   : > { %728 = vmatpush1.bf16.msra.mxu1 %v1397_v17  ;;  %v1418_v39 = vld [vmem:[#allocation9 + $0x10] sm:$0xff]   ;;  %v1419_v40 = vld [vmem:[#allocation9 + $0x58] sm:$0xff]   ;;  %v1421_v42 = vld [vmem:[#allocation9 + $0x60] sm:$0xff]   ;;  %v1951_v54 = vsub.s32 0, %v460_v51  ;;  %v465_v55 = vsub.s32 2, %v460_v51  ;;  %s2068_s30 = sld [smem:[#allocation22_spill]] }
  0xa6   : > { %729 = vmatprep.subr.bf16.mxu1 %v1398_v18  ;;  %v1420_v41 = vld [vmem:[#allocation9 + $0x18] sm:$0xff]   ;;  %v1422_v43 = vld [vmem:[#allocation9 + $0x20] sm:$0xff]   ;;  %v1423_v44 = vld [vmem:[#allocation9 + $0x68] sm:$0xff]   ;;  %s412_s16 = scalar_lea.vmem [#allocation11], %s1166_s6  ;;  %s2069_s15 = sld [smem:[#allocation23_spill]] }
  0xa7   : > { %570 = vmatpush1.bf16.msra.mxu0 %v1375_v10  ;;  %v1424_v45 = vld [vmem:[#allocation9 + $0x28] sm:$0xff]   ;;  %v1425_v46 = vld [vmem:[#allocation9 + $0x70] sm:$0xff]   ;;  %v1427_v48 = vld [vmem:[#allocation9 + $0x78] sm:$0xff]   ;;  %s1012_s23 = sshll.u32 %s412_s16, 4  ;;  %s999_s19 = scalar_lea.sflag [#allocation5], %s1927_s4  ;;  %s1974_s23 = int_to_ptr.vmem [resolvable:$true] %s1012_s23 }
  0xa8   : > { %571 = vmatprep.subr.bf16.mxu0 %v1376_v11  ;;  %v1426_v47 = vld [vmem:[#allocation9 + $0x30] sm:$0xff]   ;;  %v1428_v49 = vld [vmem:[#allocation9 + $0x38] sm:$0xff]   ;;  %s1562_s11 = scalar_lea.vmem %s1974_s23, 128  ;;  %s1664_s6 = smov [#allocation11]  }
  0xa9   : > { %730 = vmatpush1.bf16.msra.mxu1 %v1400_v22  ;;  %v456_v52 = vld [vmem:[%s2065_s12] sm:$0x3]  ;;  %p1563_p11 = scmp.ne.s32.totalorder %s1974_s23, %s1562_s11  ;;  %s1566_s13 = sshll.u32 %s1664_s6, 4  ;;  %s1567_s13 = int_to_ptr.vmem [resolvable:$false] %s1566_s13 }
  0xaa   : > { %731 = vmatprep.subr.bf16.mxu1 %v1401_v24  ;;  %v457_v53 = vunpack.c.l.bf16 %v456_v52  ;;  %v1188_v10 = vld [vmem:[%s2066_s9 + $0x2] sm:$0x3]  ;;  %s1235_s22 = sshll.u32 %s2067_s18, 7  ;;  %s1568_s12 = scalar_lea.vmem %s1567_s13, 256 }
  0xab   : > { %572 = vmatpush1.bf16.msra.mxu0 %v1378_v14  ;;  %v623_v14 = vunpack.c.l.bf16 %v1188_v10  ;;  %p1564_p10 = pnand %p1563_p11, %p1866_p3  ;;  %p1569_p7 = scmp.lt.s32.totalorder %s1974_s23, %s1567_s13 }
  0xac   : > { %573 = vmatprep.subr.bf16.mxu0 %v1379_v16  ;;  %v462_v56 = vrot.slane %v457_v53, %v1951_v54  ;;  %v466_v57 = vrot.slane %v457_v53, %v465_v55  ;;  %s1972_s27 = scalar_lea.hbm %s2069_s15, %s1235_s22  ;;  %p1570_p9 = scmp.lt.s32.totalorder %s1568_s12, %s1562_s11 }
  0xad   : > { %732 = vmatpush1.bf16.msra.mxu1 %v1403_v25  ;;  %v628_v22 = vrot.slane %v623_v14, %v1951_v54  ;;  %p1565_p5 = pneg %p1564_p10 }
  0xae   : > { %733 = vmatprep.subr.bf16.mxu1 %v1404_v26  ;;  %v472_v58 = vrot.slane %v462_v56, %v1951_v54  ;;  %v476_v59 = vrot.slane %v466_v57, %v1951_v54  ;;  %p1571_p12 = por %p1570_p9, %p1569_p7 }
  0xaf   : > { %574 = vmatpush1.bf16.msra.mxu0 %v1381_v19  ;;  %v638_v24 = vrot.slane %v628_v22, %v1951_v54 }
  0xb0   : > { %575 = vmatprep.subr.bf16.mxu0 %v1382_v20  ;;  %p1572_p1 = pnand %p1571_p12, %p1565_p5 }
  0xb1   : > { %734 = vmatpush1.bf16.msra.mxu1 %v1406_v28 }
  0xb2   : > { %735 = vmatprep.subr.bf16.mxu1 %v1407_v30 }
  0xb3   : > { %576 = vmatpush1.bf16.msra.mxu0 %v1384_v21 }
  0xb4   : > { %577 = vmatprep.subr.bf16.mxu0 %v1388_v23  ;;  %v632_v23 = vrot.slane %v623_v14, %v465_v55 }
  0xb5   : > { %736 = vmatpush1.bf16.msra.mxu1 %v1409_v31 }
  0xb6   : > { %737 = vmatprep.subr.bf16.mxu1 %v1410_v32  ;;  %v642_v25 = vrot.slane %v632_v23, %v1951_v54 }
  0xb7   : > { %578 = vmatpush1.bf16.msra.mxu0 %v1390_v27 }
  0xb8   : > { %1241 = vmatprep.subr.bf16.mxu0 %v1413_v34 }
  0xb9   : > { %738 = vmatpush1.bf16.msra.mxu1 %v1412_v33 }
  0xba   : > { %596 = vmatmul.mubr.bf16.vlgmr.msra.gmra.mrb[0].mxu0 %v1394_v29 }
  0xbb   : > { %1242 = vmatpush3.bf16.msra.mxu0 %v1414_v35 }
  0xbc   : > { %756 = vmatmul.mubr.bf16.vlgmr.msra.gmra.mrb[0].mxu1 %v1394_v29  ;;  %1243 = vmatprep.subr.bf16.mxu0 %v1415_v36 }
  0xbf   : > { %1244 = vmatpush3.bf16.msra.mxu0 %v1416_v37 }
  0xc0   : > { %1245 = vmatprep.subr.bf16.mxu0 %v1417_v38 }
  0xc3   : > { %1246 = vmatpush3.bf16.msra.mxu0 %v1418_v39 }
  0xc4   : > { %1247 = vmatprep.subr.bf16.mxu0 %v1419_v40 }
  0xc7   : > { %1248 = vmatpush3.bf16.msra.mxu0 %v1420_v41 }
  0xc8   : > { %1249 = vmatprep.subr.bf16.mxu0 %v1421_v42 }
  0xcb   : > { %1250 = vmatpush3.bf16.msra.mxu0 %v1422_v43 }
  0xcc   : > { %1251 = vmatprep.subr.bf16.mxu0 %v1423_v44  ;;  %v980_v44 = vld [vmem:[%s2068_s30] sm:$0x1] }
  0xcf   : > { %1252 = vmatpush3.bf16.msra.mxu0 %v1424_v45  ;;  %v981_v45 = vunpack.c.l.bf16 %v980_v44 }
  0xd0   : > { %1253 = vmatprep.subr.bf16.mxu0 %v1425_v46 }
  0xd3   : > { %1254 = vmatpush3.bf16.msra.mxu0 %v1426_v47 }
  0xd4   : > { %1255 = vmatprep.subr.bf16.mxu0 %v1427_v48 }
  0xd7   : > { %1256 = vmatpush3.bf16.msra.mxu0 %v1428_v49  ;;  %v985_v49 = vrot.slane %v981_v45, %v1951_v54 }
 0x18d   : > { %v597_v60 = vpop.f32.mrb[0].mxu0 }
 0x18e   : > { %v598_v61 = vadd.f32 %v597_v60, %v472_v58  ;;  %v599_v62 = vpop.f32.mrb[1].mxu0 }
 0x18f   : > { %v600_v63 = vadd.f32 %v599_v62, %v476_v59  ;;  %v601_v0 = vpop.f32.mrb[2].mxu0  ;;  %v757_v8 = vpop.f32.mrb[0].mxu1 }
 0x190   : > { %v1205_v1 = vmul.f32 -1.442695, %v598_v61  ;;  %v602_v2 = vadd.f32 %v601_v0, %v472_v58  ;;  %v603_v3 = vpop.f32.mrb[3].mxu0  ;;  %v759_v9 = vpop.f32.mrb[1].mxu1  ;;  %v758_v26 = vadd.f32 %v757_v8, %v638_v24 }
 0x191   : > { %v1206_v4 = vmul.f32 -1.442695, %v600_v63  ;;  %v604_v5 = vadd.f32 %v603_v3, %v476_v59  ;;  %v761_v11 = vpop.f32.mrb[2].mxu1  ;;  %v760_v28 = vadd.f32 %v759_v9, %v642_v25 }
 0x192   : > { %1429 = vpow2.f32 %v1205_v1  ;;  %v1207_v6 = vmul.f32 -1.442695, %v602_v2  ;;  %v763_v12 = vpop.f32.mrb[3].mxu1  ;;  %v762_v36 = vadd.f32 %v761_v11, %v638_v24 }
 0x193   : > { %1431 = vpow2.f32 %v1206_v4  ;;  %v1208_v7 = vmul.f32 -1.442695, %v604_v5  ;;  %v764_v39 = vadd.f32 %v763_v12, %v642_v25 }
 0x194   : > { %1433 = vpow2.f32 %v1207_v6 }
 0x195   : > { %1435 = vpow2.f32 %v1208_v7 }
 0x19c   : > { %v1430_v13 = vpop.eup %1429 }
 0x19d   : > { %v1432_v15 = vpop.eup %1431  ;;  %v778_v16 = vadd.f32 1.0, %v1430_v13 }
 0x19e   : > { %v1434_v17 = vpop.eup %1433  ;;  %v779_v18 = vadd.f32 1.0, %v1432_v15 }
 0x19f   : > { %v1436_v19 = vpop.eup %1435  ;;  %1437 = vrcp.f32 %v778_v16  ;;  %v780_v20 = vadd.f32 1.0, %v1434_v17 }
 0x1a0   : > { %1439 = vrcp.f32 %v779_v18  ;;  %v781_v21 = vadd.f32 1.0, %v1436_v19 }
 0x1a1   : > { %1441 = vrcp.f32 %v780_v20 }
 0x1a2   : > { %1443 = vrcp.f32 %v781_v21 }
 0x1a9   : > { %v1438_v27 = vpop.eup %1437 }
 0x1aa   : > { %v1440_v29 = vpop.eup %1439  ;;  %v790_v30 = vmul.f32 %v1438_v27, %v598_v61 }
 0x1ab   : > { %v1442_v31 = vpop.eup %1441  ;;  %v791_v32 = vmul.f32 %v1440_v29, %v600_v63 }
 0x1ac   : > { %v1444_v33 = vpop.eup %1443  ;;  %v792_v34 = vmul.f32 %v1442_v31, %v602_v2  ;;  %v794_v35 = vmul.f32 %v790_v30, %v758_v26 }
 0x1ad   : > { %v793_v37 = vmul.f32 %v1444_v33, %v604_v5  ;;  %v795_v38 = vmul.f32 %v791_v32, %v760_v28 }
 0x1ae   : > { %v796_v40 = vmul.f32 %v792_v34, %v762_v36 }
 0x1af   : > { %v797_v41 = vmul.f32 %v793_v37, %v764_v39 }
 0x1b0   : > { %v800_v42 = vpack.c.bf16 %v796_v40, %v794_v35 }
 0x1b1   : > { %v801_v43 = vpack.c.bf16 %v797_v41, %v795_v38 }
 0x1b3   : > { %962 = vmatprep.mubr.bf16.mxu0 %v801_v43 }
 0x1b4   : > { %963 = vmatmul.mubr.bf16.vlgmr.msra.gmra.mrb[4].mxu0 %v800_v42 }
 0x287   : > { %v1257_v46 = vpop.f32.mrb[4].mxu0 }
 0x288   : > { %v1258_v47 = vpop.f32.mrb[5].mxu0 }
 0x289   : > { %v1259_v48 = vadd.f32 %v1258_v47, %v1257_v46  ;;  %v1260_v50 = vpop.f32.mrb[6].mxu0 }
 0x28a   : > { %v1261_v51 = vpop.f32.mrb[7].mxu0 }
 0x28b   : > { %v1262_v52 = vadd.f32 %v1261_v51, %v1260_v50  ;;  %v986_v53 = vadd.f32 %v1259_v48, %v985_v49 }
 0x28d   : > { %v987_v55 = vadd.f32 %v1262_v52, %v985_v49 }
 0x28f   : > { %v1239_v54 = vpack.c.bf16 %v987_v55, %v986_v53 }
 0x291   : > { %1240 = vst [vmem:[%s412_s16] sm:$0xff] %v1239_v54  }
 0x292   : > { %1575 = shalt.err (!%p1572_p1)
}
 0x293   : > { %s1576_s10 = scalar_lea.hbm %s1972_s27, 128  ;;  %s1580_s18 = scalar_lea.hbm %s2069_s15, 256 }
 0x294   : > { %p1577_p6 = scmp.ne.s32.totalorder %s1972_s27, %s1576_s10  ;;  %p1581_p0 = scmp.lt.u32.totalorder %s1972_s27, %s2069_s15 }
 0x295   : > { %p1582_p2 = scmp.lt.u32.totalorder %s1580_s18, %s1576_s10  ;;  %p1584_p11 = scmp.lt.u32.totalorder %s1576_s10, %s1972_s27 }
 0x296   : > { %p1578_p13 = pnand %p1577_p6, %p1866_p3 }
 0x297   : > { %p1583_p8 = por %p1582_p2, %p1581_p0 }
 0x298   : > { %p1579_p4 = pneg %p1578_p13 }
 0x299   : > { %p1585_p10 = por %p1584_p11, %p1583_p8 }
 0x29b   : > { %p1586_p5 = pnand %p1585_p10, %p1579_p4 }
 0x29d   : > { %1589 = shalt.err (!%p1586_p5)
}
 0x29e   : > { %s1665_s30 = smov 64   ;;  %s1666_s22 = smov 4  }
 0x29f   : > { %1277 = dma.vmem_to_hbm [thread:$0]  (%p1866_p3), %s1974_s23, 128, %s1972_s27, %s999_s19, %s1665_s30, %s1665_s30, %s1666_s22  }
 0x2a0 PF: > { %s2070_s16 = sld [smem:[#allocation16_spill]]  ;;  %s2071_s8 = sld [smem:[#allocation19_spill]] }
 0x2a1   : > { %p2073_p9 = scmp.ge.s32.totalorder %s1652_s29, 2 }
 0x2a6   : > { %s1027_s3 = sand.u32 1, %s2070_s16   ;;  %p2072_p7 = scmp.ne.s32.totalorder %s2071_s8, 0 }
 0x2a7   : > { %s1028_s11 = scalar_lea.sflag [#allocation5], %s1027_s3 }
 0x2a8   : > { %p1294_p12 = pnand %p2073_p9, %p2072_p7 }
 0x2aa   : > { %1627 = dma.done.wait (!%p1294_p12), %s1028_s11, 128  }
 0x2ab   : > { %1629 = vsyncadd (!%p1294_p12), %s1028_s11, 4294967168  ;;  %s25_s29 = sadd.s32 1, %s1652_s29   ;;  %s2074_s6 = smov %s1878_s24 }
 0x2ac   : > { %p22_p1 = scmp.ge.s32.totalorder %s25_s29, 4   ;;  %s2075_s24 = smov %s1636_s25 }
 0x2ad   : > { %s2076_s25 = smov %s1640_s26  ;;  %s2077_s26 = smov %s2074_s6 }
 0x2ae   : > { %s2078_s27 = smov %s1648_s28  ;;  %s2079_s28 = smov %s2081_s17 }
 0x2af   :  { %24 = sbr.rel (!%p22_p1) target bundleno = 13 (0xd), region = 122 }
 0x2b6   :  { %1033 = vsyncpa [#allocation4], 1 }
 0x2b7   :  { %1035 = vsyncpa [#allocation4 + $0x1], 1 }
 0x2b8   :  { %1036 = vsyncpa [#allocation7], 1 }
 0x2b9   :  { %1037 = vsyncpa [#allocation10], 1 }
 0x2ba   :  { %1038 = vsyncpa [#allocation5], 1 }
 0x2bb   :  { %1040 = vsyncpa [#allocation5 + $0x1], 1 }

</bundles_post_ra>
